<compile_context>
chip_gen: v5e
topology: v5e:2x2
jax: 0.10.0
libtpu: 0.0.40
codegen_flags: <defaults>
</compile_context>

<pallas_src>
import math

import jax
import jax.numpy as jnp
from jax.experimental import pallas as pl
from jax.experimental.pallas import tpu as pltpu


def _round_up(x, m):
    return (x + m - 1) // m * m


def _pick_divisor_tile(total, cap, align):
    """Largest multiple of `align` that exactly divides `total`, capped at `cap`."""
    if total <= cap:
        return total
    best = align
    t = align
    while t <= cap:
        if total % t == 0:
            best = t
        t += align
    return best


def _vmem_capacity_bytes():
    """Physical VMEM per TensorCore; conservative fallback if query fails."""
    try:
        return int(pltpu.get_tpu_info().vmem_capacity_bytes)
    except Exception:
        return 64 * 1024 * 1024  # v7x-sized fallback: safe on every generation


# ----------------------------------------------------------------------------
# Kernel bodies
# ----------------------------------------------------------------------------
def _linear_kernel_single_k(x_ref, w_ref, b_ref, o_ref):
    # grid_k == 1: single K block -> no accumulator scratch, write output directly.
    o_ref[...] = (
        jnp.dot(x_ref[...], w_ref[...], preferred_element_type=jnp.float32)
        + b_ref[...].astype(jnp.float32)
    ).astype(o_ref.dtype)


def _linear_kernel_acc(x_ref, w_ref, b_ref, o_ref, acc_ref):
    # x_ref: (tm, tk)  w_ref: (tk, tn)  b_ref: (1, tn)  o_ref: (tm, tn)
    k = pl.program_id(2)
    prod = jnp.dot(x_ref[...], w_ref[...], preferred_element_type=jnp.float32)

    @pl.when(k == 0)
    def _():
        acc_ref[...] = prod          # first K step writes directly (no zero-fill pass)

    @pl.when(k > 0)
    def _():
        acc_ref[...] += prod

    @pl.when(k == pl.num_programs(2) - 1)
    def _():
        o_ref[...] = (acc_ref[...] + b_ref[...].astype(jnp.float32)).astype(o_ref.dtype)


# ----------------------------------------------------------------------------
# Module wrapper (prep work done once at construction)
# ----------------------------------------------------------------------------
class LinearNorm:
    """y = x @ weight.T + bias  (torch.nn.Linear forward semantics).

    weight: (out_dim, in_dim) torch layout; padded + transposed once here.
    bias:   (out_dim,) or None.
    """

    def __init__(self, weight, bias=None, *, tm=256, tn_cap=512, tk_cap=512):
        out_dim, in_dim = weight.shape
        self.in_dim = int(in_dim)
        self.out_dim = int(out_dim)
        self.tm_default = tm
        self.tn_cap = tn_cap
        self.tk_cap = tk_cap

        # Lane-dense N padding (multiple of 128).
        out_pad = _round_up(out_dim, 128)
        # K padding: only pad when in_dim is both unaligned AND too big for a
        # single K block (zeros do not change the dot).
        if in_dim % 128 == 0 or in_dim <= tk_cap:
            k_pad = in_dim
        else:
            k_pad = _round_up(in_dim, 128)
        self.out_pad = out_pad
        self.k_pad = k_pad

        w = weight
        if out_pad != out_dim:
            w = jnp.pad(w, ((0, out_pad - out_dim), (0, 0)))
        if k_pad != in_dim:
            w = jnp.pad(w, ((0, 0), (0, k_pad - in_dim)))
        # One-time transpose to (K, N): kernel issues a plain (tm,tk)@(tk,tn) dot.
        self.w_t = jnp.asarray(w.T)

        if bias is None:
            bias = jnp.zeros((out_dim,), weight.dtype)
        self.b2d = jnp.pad(bias, (0, out_pad - out_dim)).reshape(1, out_pad)

    def __call__(self, x):
        in_dim, out_dim = self.in_dim, self.out_dim
        out_pad, k_pad = self.out_pad, self.k_pad
        assert x.shape[-1] == in_dim

        lead_shape = x.shape[:-1]
        m = math.prod(lead_shape) if lead_shape else 1
        x2d = x.reshape(m, in_dim)
        if k_pad != in_dim:
            x2d = jnp.pad(x2d, ((0, 0), (0, k_pad - in_dim)))

        itemsize = max(jnp.dtype(x.dtype).itemsize, jnp.dtype(self.w_t.dtype).itemsize)
        pack = {1: 32, 2: 16, 4: 8}.get(jnp.dtype(x.dtype).itemsize, 8)

        # --- tile selection ---------------------------------------------------
        tm = min(self.tm_default, _round_up(m, pack))
        tm = _round_up(tm, pack)

        vmem_cap = _vmem_capacity_bytes()
        budget = int(0.6 * vmem_cap)  # ~38 MiB on v7x, ~77 MiB on v5e/v6e

        # Weight-resident path: single N/K block -> weight & bias DMA'd exactly
        # once for the whole call; no f32 accumulator round-trip.
        resident_bytes = itemsize * 2 * (
            tm * k_pad + k_pad * out_pad + out_pad + tm * out_pad
        )
        if resident_bytes <= budget:
            tn, tk = out_pad, k_pad
        else:
            # N: never below 256 when tiled (ragged tail handled by masked store).
            tn = out_pad if out_pad <= self.tn_cap else self.tn_cap
            # K: must divide k_pad exactly (reduction dim can't be ragged).
            tk = k_pad if k_pad <= self.tk_cap else _pick_divisor_tile(
                k_pad, self.tk_cap, 128)

        grid_m = pl.cdiv(m, tm)
        grid_n = pl.cdiv(out_pad, tn)
        grid_k = k_pad // tk  # tk always divides k_pad exactly

        # v7x has 2 TensorCores: make sure the parallel axes expose >= 2 blocks.
        if grid_m * grid_n == 1 and m > pack:
            tm = _round_up(max(pack, -(-m // 2)), pack)
            grid_m = pl.cdiv(m, tm)

        grid = (grid_m, grid_n, grid_k)

        if grid_k == 1:
            kernel = _linear_kernel_single_k
            scratch_shapes = []
            acc_bytes = 0
        else:
            kernel = _linear_kernel_acc
            scratch_shapes = [pltpu.VMEM((tm, tn), jnp.float32)]
            acc_bytes = tm * tn * 4

        # --- VMEM budget (always explicit, generation-aware cap) --------------
        vmem_est = itemsize * 2 * (tm * tk + tk * tn + tn + tm * tn) + acc_bytes
        vmem_limit = min(int(0.85 * vmem_cap),
                         max(int(vmem_est * 1.25), 32 * 1024 * 1024))

        # --- output shape: avoid full-output slice copy for wide outputs ------
        narrow = out_dim < 128
        out_cols = out_pad if narrow else out_dim  # masked tail store when ragged

        cost = pl.CostEstimate(
            flops=2 * m * out_pad * k_pad,
            transcendentals=0,
            bytes_accessed=itemsize * (m * k_pad + k_pad * out_pad + out_pad
                                       + m * out_cols),
        )

        out = pl.pallas_call(
            kernel,
            out_shape=jax.ShapeDtypeStruct((m, out_cols), x.dtype),
            grid_spec=pltpu.PrefetchScalarGridSpec(
                num_scalar_prefetch=0,
                grid=grid,
                in_specs=[
                    pl.BlockSpec((tm, tk), lambda i, j, k: (i, k)),   # x rows
                    pl.BlockSpec((tk, tn), lambda i, j, k: (k, j)),   # weight (K, N)
                    pl.BlockSpec((1, tn), lambda i, j, k: (0, j)),    # bias
                ],
                out_specs=pl.BlockSpec((tm, tn), lambda i, j, k: (i, j)),
                scratch_shapes=scratch_shapes,
            ),
            compiler_params=pltpu.CompilerParams(
                dimension_semantics=("parallel", "parallel", "arbitrary"),
                vmem_limit_bytes=vmem_limit,
            ),
            cost_estimate=cost,
        )(x2d, self.w_t, self.b2d)

        if narrow and out_cols != out_dim:
            out = out[:, :out_dim]
        return out.reshape(*lead_shape, out_dim)


def linear_norm(x, weight, bias=None, **kwargs):
    """Functional convenience wrapper (pads/transposes the weight per call;
    prefer constructing LinearNorm once when the weight is reused)."""
    return LinearNorm(weight, bias, **kwargs)(x)


def init_linear_norm_params(key, in_dim, out_dim, w_init_gain="linear",
                            dtype=jnp.float32):
    """xavier_uniform_ weight init (torch gain) + default torch bias init."""
    gain = {"linear": 1.0, "relu": math.sqrt(2.0), "tanh": 5.0 / 3.0}[w_init_gain]
    bound = gain * math.sqrt(6.0 / (in_dim + out_dim))
    wkey, _ = jax.random.split(key)
    weight = jax.random.uniform(
        wkey, (out_dim, in_dim), dtype=dtype, minval=-bound, maxval=bound
    )
    bkey = jax.random.fold_in(key, 1)
    b_bound = 1.0 / math.sqrt(in_dim)
    bias = jax.random.uniform(
        bkey, (out_dim,), dtype=dtype, minval=-b_bound, maxval=b_bound
    )
    return weight, bias


if __name__ == "__main__":
    key = jax.random.PRNGKey(0)
    batch, seq, in_dim, out_dim = 2, 8, 32, 48

    xkey, pkey = jax.random.split(key)
    x = jax.random.normal(xkey, (batch, seq, in_dim), dtype=jnp.float32)
    weight, bias = init_linear_norm_params(pkey, in_dim, out_dim)

    layer = LinearNorm(weight, bias)           # pad + transpose once
    y = jax.block_until_ready(layer(x))

    # Reference check against plain JAX (same math as torch.nn.Linear).
    y_ref = x @ weight.T + bias
    assert y.shape == (batch, seq, out_dim)
    assert jnp.allclose(y, y_ref, atol=1e-5, rtol=1e-5)

    print("KERNEL_OK")
</pallas_src>

<mosaic_0001>
module attributes {stable_mosaic.version = 11 : i64} {
  func.func @_linear_kernel_single_k(%arg0: i32, %arg1: i32, %arg2: i32, %arg3: memref<8x32xf32, #tpu.memory_space<vmem>>, %arg4: memref<32x128xf32, #tpu.memory_space<vmem>>, %arg5: memref<1x128xf32, #tpu.memory_space<vmem>>, %arg6: memref<8x128xf32, #tpu.memory_space<vmem>>) attributes {dimension_semantics = [#tpu.dimension_semantics<parallel>, #tpu.dimension_semantics<parallel>, #tpu.dimension_semantics<arbitrary>], iteration_bounds = array<i64: 2, 1, 1>, scalar_prefetch = 0 : i64, scratch_operands = 0 : i64, tpu.core_type = #tpu.core_type<tc>, window_params = [{transform_indices = @transform_0, window_bounds = array<i64: 8, 32>}, {transform_indices = @transform_1, window_bounds = array<i64: 32, 128>}, {transform_indices = @transform_2, window_bounds = array<i64: 1, 128>}, {transform_indices = @transform_3, window_bounds = array<i64: 8, 128>}]} {
    %c0 = arith.constant 0 : index
    %c0_0 = arith.constant 0 : index
    %0 = vector.load %arg3[%c0, %c0_0] : memref<8x32xf32, #tpu.memory_space<vmem>>, vector<8x32xf32>
    %c0_1 = arith.constant 0 : index
    %c0_2 = arith.constant 0 : index
    %1 = vector.load %arg4[%c0_1, %c0_2] : memref<32x128xf32, #tpu.memory_space<vmem>>, vector<32x128xf32>
    %cst = arith.constant dense<0.000000e+00> : vector<8x128xf32>
    %2 = tpu.matmul %0, %1, %cst {dimension_numbers = #tpu.dot_dimension_numbers<[1], [0], [0], [1], [0, 0, 1, 1], [], []>} : vector<8x32xf32>, vector<32x128xf32>, vector<8x128xf32> -> vector<8x128xf32>
    %c0_3 = arith.constant 0 : index
    %c0_4 = arith.constant 0 : index
    %3 = vector.load %arg5[%c0_3, %c0_4] : memref<1x128xf32, #tpu.memory_space<vmem>>, vector<1x128xf32>
    %4 = vector.broadcast %3 : vector<1x128xf32> to vector<8x128xf32>
    %5 = arith.addf %2, %4 : vector<8x128xf32>
    %c0_5 = arith.constant 0 : index
    %c0_6 = arith.constant 0 : index
    %6 = vector.load %arg6[%c0_5, %c0_6] : memref<8x128xf32, #tpu.memory_space<vmem>>, vector<8x128xf32>
    tpu.vector_store %arg6[%c0_5, %c0_6], %5 {strides = array<i32>} : memref<8x128xf32, #tpu.memory_space<vmem>>, vector<8x128xf32>,
    return
  }
  func.func @transform_0(%arg0: i32, %arg1: i32, %arg2: i32) -> (i32, i32) {
    %c0_i32 = arith.constant 0 : i32
    return %arg0, %arg2 : i32, i32
  }
  func.func @transform_1(%arg0: i32, %arg1: i32, %arg2: i32) -> (i32, i32) {
    %c0_i32 = arith.constant 0 : i32
    return %arg2, %arg1 : i32, i32
  }
  func.func @transform_2(%arg0: i32, %arg1: i32, %arg2: i32) -> (i32, i32) {
    %c0_i32 = arith.constant 0 : i32
    %c0_i32_0 = arith.constant 0 : i32
    return %c0_i32, %arg1 : i32, i32
  }
  func.func @transform_3(%arg0: i32, %arg1: i32, %arg2: i32) -> (i32, i32) {
    %c0_i32 = arith.constant 0 : i32
    return %arg0, %arg1 : i32, i32
  }
}

</mosaic_0001>

<bundles_post_ra>
// kernel: tpu_custom_call.1
= control target key start
LH: loop header
LB: loop body
LE: loop exit
PB: predicated region body
PF: predicated region fallthrough
CT: control target
= control target key end

     0   :  { %8 = vsyncpa [#allocation3], 0  ;;  %s825_s0 = inlined_call_operand.hbm [shape: f32[16,32], index: 0, kind: input, shape index: {}]   ;;  %s826_s1 = inlined_call_operand.hbm [shape: f32[32,128], index: 1, kind: input, shape index: {}]   ;;  %s827_s2 = inlined_call_operand.vmem [shape: f32[1,128], index: 2, kind: input, shape index: {}]   ;;  %s828_s3 = inlined_call_operand.hbm [shape: f32[16,128], index: 3, kind: output, shape index: {}]  }
   0x1   :  { %10 = vsyncpa [#allocation3 + $0x1], 0 }
   0x2   :  { %11 = vsyncpa [#allocation6], 0 }
   0x3   :  { %12 = vsyncpa [#allocation4], 0 }
   0x4   :  { %14 = vsyncpa [#allocation4 + $0x1], 0  ;;  %s679_s12 = smov 0   ;;  %s681_s13 = smov 0  }
   0x5   :  { %s683_s14 = smov 0   ;;  %s685_s15 = smov 0  }
   0x6   :  { %s687_s16 = smov 0   ;;  %s689_s17 = smov 0  }
   0x7 LB: > { %s415_s18 = sadd.s32 4294967295, %s654_s17   ;;  %p417_p0 = scmp.ge.s32.totalorder %s654_s17, 1  ;;  %s654_s17 = sphi %s689_s17, %s20_s17   ;;  %s650_s16 = sphi %s687_s16, %s839_s16   ;;  %s646_s15 = sphi %s685_s15, %s838_s15   ;;  %s642_s14 = sphi %s683_s14, %s837_s14   ;;  %s638_s13 = sphi %s681_s13, %s836_s13   ;;  %s634_s12 = sphi %s679_s12, %s835_s12  }
   0x8   : > { %p711_p1 = scmp.eq.s32.totalorder %s415_s18, 0  ;;  %p154_p2 = scmp.lt.s32.totalorder %s654_s17, 3 }
   0x9   : > { %s169_s22 = sshll.u32 %s826_s1, 4  ;;  %s656_s24 = smov [#allocation5]   ;;  %s170_s22 = int_to_ptr.hbm [resolvable:$true] %s169_s22 }
   0xa   : > { %p719_p3 = pnand %p417_p0, %p154_p2  ;;  %s171_s25 = sshll.u32 %s656_s24, 4  ;;  %s172_s25 = int_to_ptr.vmem [resolvable:$true] %s171_s25 }
   0xb   : > { %p420_p6 = scmp.ge.s32.totalorder %s654_s17, 2  ;;  %s657_s26 = smov 128  }
   0xc   : > { %p440_p4 = pneg %p719_p3  ;;  %s658_s27 = smov 8  }
   0xd   : > { %s416_s28 = sadd.s32 4294967294, %s654_s17   ;;  %s39_s29 = sadd.s32 1, %s650_s16 }
   0xe   : > { %p441_p5 = pnand %p440_p4, %p711_p1  ;;  %s48_s30 = sadd.s32 1, %s642_s14 }
   0xf   : > { %p41_p7 = scmp.ge.s32.totalorder %s39_s29, 2  ;;  %p55_p8 = scmp.ne.s32.totalorder %s642_s14, %s638_s13 }
  0x10   : > { %443 = dma.hbm_to_vmem [thread:$0]  (!%p441_p5), %s170_s22, 512, %s172_s25, [#allocation6], %s657_s26, %s657_s26, %s658_s27  }
  0x11   : > { %p56_p9 = scmp.eq.s32.totalorder %s654_s17, 0  ;;  %p61_p10 = scmp.ne.s32.totalorder %s638_s13, %s634_s12 }
  0x12   : > { %s841_s29 = smov (%p41_p7, %s39_s29), 0  ;;  %p141_p13 = scmp.eq.s32.totalorder %s415_s18, 1 }
  0x13   : > { %p738_p11 = por %p56_p9, %p55_p8  ;;  %p744_p12 = por %p711_p1, %p61_p10 }
  0x14   : > { %s43_s6 = ssub.s32 %s650_s16, %s841_s29  ;;  %p147_p2 = scmp.eq.s32.totalorder %s416_s28, 1 }
  0x15   : > { %p46_p0 = scmp.eq.s32.totalorder %s43_s6, 0  ;;  %p750_p4 = por %p141_p13, %p55_p8 }
  0x16   : > { %p453_p5 = scmp.lt.s32.totalorder %s654_s17, 2  ;;  %p758_p7 = por %p147_p2, %p61_p10 }
  0x17   : > { %s756_s8 = scalar_select %p46_p0, %s642_s14, %s48_s30  }
  0x18   : > { %s191_s10 = sand.u32 1, %s642_s14   ;;  %s422_s20 = sshll.u32 %s650_s16, 3 }
  0x19   : > { %s421_s11 = sshll.u32 %s191_s10, 3  ;;  %s200_s18 = scalar_lea.hbm %s825_s0, %s422_s20 }
  0x1a   : > { %s195_s24 = scalar_lea.vmem [#allocation2], %s421_s11  ;;  %s202_s26 = sshll.u32 %s200_s18, 4  ;;  %s203_s26 = int_to_ptr.hbm [resolvable:$true] %s202_s26 }
  0x1b   : > { %s204_s25 = sshll.u32 %s195_s24, 4  ;;  %p445_p8 = pnand %p453_p5, %p738_p11  ;;  %s205_s25 = int_to_ptr.vmem [resolvable:$true] %s204_s25 }
  0x1c   : > { %s192_s27 = scalar_lea.sflag [#allocation3], %s191_s10  ;;  %213 = sbr.rel (%p719_p3) target bundleno = 175 (0xaf), region = 32 }
  0x1d   : > { %447 = dma.hbm_to_vmem [thread:$0]  (!%p445_p8), %s203_s26, 128, %s205_s25, %s192_s27  }
  0x1e   : > { %s772_s28 = sand.u32 (!%p719_p3), 1, %s638_s13  }
  0x1f   : > { %s424_s30 = sshll.u32 (!%p719_p3), %s772_s28, 3  ;;  %s216_s6 = scalar_lea.sflag (!%p719_p3), [#allocation3], %s772_s28 }
  0x20   : > { %s219_s11 = scalar_lea.vmem (!%p719_p3), [#allocation2], %s424_s30 }
  0x21   : > { %621 = dma.done.wait (%p744_p12), %s216_s6, 128  }
  0x22   : > { %623 = vsyncadd (%p744_p12), %s216_s6, 4294967168 }
  0x23   : > { %625 = dma.done.wait (%p711_p1), [#allocation6], 512  }
  0x24   : > { %627 = vsyncadd (%p711_p1), [#allocation6], 4294966784  ;;  %v259_v0 = vld [vmem:[#allocation5 + $0x18] sm:$0xff]  ;;  %v258_v1 = vld [vmem:[#allocation5 + $0x10] sm:$0xff]  ;;  %vm264_vm0 = vcmask 261120   ;;  %s429_s23 = sshll.u32 %s646_s15, 3 }
  0x25   : > { %280 = vmatpush.msra.mxu0 %v259_v0  ;;  %v257_v2 = vld [vmem:[#allocation5 + $0x8] sm:$0xff]  ;;  %v256_v3 = vld [vmem:[#allocation5] sm:$0xff]  ;;  %v255_v4 = vld [vmem:[%s219_s11] sm:$0xff]  ;;  %s301_s19 = scalar_lea.hbm %s828_s3, %s429_s23  ;;  %s250_s21 = scalar_lea.vmem [#allocation7], %s424_s30 }
  0x26   : > { %v507_v5 = vld [vmem:[%s827_s2] ss:$0 sm:$0xff]  ;;  %s303_s22 = sshll.u32 %s250_s21, 4  ;;  %s305_s18 = sshll.u32 %s301_s19, 4  ;;  %s304_s22 = int_to_ptr.vmem [resolvable:$true] %s303_s22  ;;  %s306_s18 = int_to_ptr.hbm [resolvable:$true] %s305_s18 }
  0x27   : > { %281 = vmatpush.msra.mxu0 %v258_v1  ;;  %s290_s24 = scalar_lea.sflag [#allocation4], %s772_s28  ;;  %s582_s25 = sshra.s32 %s306_s18, 4  ;;  %s583_s25 = int_to_ptr.hbm [resolvable:$true] %s582_s25 }
  0x28   : > { %s584_s15 = scalar_lea.hbm %s583_s25, 8  ;;  %s588_s6 = scalar_lea.hbm %s828_s3, 16 }
  0x29   : > { %282 = vmatpush.msra.mxu0 %v257_v2  ;;  %p585_p1 = scmp.ne.s32.totalorder %s583_s25, %s584_s15  ;;  %p589_p10 = scmp.lt.s32.totalorder %s583_s25, %s828_s3 }
  0x2a   : > { %p590_p11 = scmp.lt.s32.totalorder %s588_s6, %s584_s15 }
  0x2b   : > { %283 = vmatpush.msra.mxu0 %v256_v3  ;;  %p586_p3 = pnand %p585_p1, %p750_p4 }
  0x2c   : > { %427 = vmatmul.msk.f32.vlgmr.msra.gmra.mxu0 %vm264_vm0, %v255_v4  ;;  %p591_p12 = por %p590_p11, %p589_p10 }
  0x2d   : > { %p587_p9 = pneg %p586_p3 }
  0x2f   : > { %p592_p13 = pnand %p591_p12, %p587_p9 }
  0xa9   : > { %v285_v6 = vpop.f32.mrf.mxu0 }
  0xaa   : > { %v286_v7 = vadd.f32 %v507_v5, %v285_v6 }
  0xac   : > { %288 = vst [vmem:[%s250_s21] sm:$0xff] %v286_v7 }
  0xad   : > { %595 = shalt.err (!%p592_p13)
}
  0xae   : > { %438 = dma.vmem_to_hbm [thread:$0]  (%p750_p4), %s304_s22, 128, %s306_s18, %s290_s24  }
  0xaf PF: > { %s317_s28 = sand.u32 1, %s634_s12   ;;  %p449_p0 = pnand %p420_p6, %p758_p7 }
  0xb0   : > { %s318_s23 = scalar_lea.sflag [#allocation4], %s317_s28 }
  0xb1   : > { %p450_p2 = pneg %p449_p0 }
  0xb3   : > { %629 = dma.done.wait (%p450_p2), %s318_s23, 128  }
  0xb4   : > { %631 = vsyncadd (%p450_p2), %s318_s23, 4294967168  ;;  %s20_s17 = sadd.s32 1, %s654_s17   ;;  %s835_s12 = smov %s638_s13 }
  0xb5   : > { %p17_p5 = scmp.ge.s32.totalorder %s20_s17, 4   ;;  %s836_s13 = smov %s642_s14 }
  0xb6   : > { %s837_s14 = smov %s756_s8  ;;  %s838_s15 = smov %s650_s16 }
  0xb7   : > { %s839_s16 = smov %s841_s29  ;;  %19 = sbr.rel (!%p17_p5) target bundleno = 7 (0x7), region = 85 }
  0xbc   :  { %324 = vsyncpa [#allocation3], 1 }
  0xbd   :  { %326 = vsyncpa [#allocation3 + $0x1], 1 }
  0xbe   :  { %327 = vsyncpa [#allocation6], 1 }
  0xbf   :  { %328 = vsyncpa [#allocation4], 1 }
  0xc0   :  { %330 = vsyncpa [#allocation4 + $0x1], 1 }

</bundles_post_ra>
